<compile_context>
chip_gen: v7x
topology: tpu7x:2x2x1
jax: 0.10.0
libtpu: 0.0.40
codegen_flags: <defaults>
</compile_context>

<pallas_src>
import functools

import jax
import jax.numpy as jnp
from jax.experimental import pallas as pl
from jax.experimental.pallas import tpu as pltpu


def _round_up(x, m):
    return ((x + m - 1) // m) * m


def _gather_rows_kernel(ids_ref, w_hbm, out_ref, sem, *, tq, lookahead):
    """One grid step: gather TQ embedding rows from the HBM table straight into
    the (TQ, D) VMEM output tile via data-dependent row DMAs, keeping up to
    `lookahead` copies in flight (issue/complete overlap)."""
    base = pl.program_id(0) * tq

    def start(i):
        tok = ids_ref[base + i]
        pltpu.make_async_copy(
            w_hbm.at[pl.ds(tok, 1), :], out_ref.at[pl.ds(i, 1), :], sem
        ).start()

    def wait(i):
        # Only the transfer size matters for the wait; row 0 is a dummy src.
        pltpu.make_async_copy(
            w_hbm.at[pl.ds(0, 1), :], out_ref.at[pl.ds(i, 1), :], sem
        ).wait()

    la = min(lookahead, tq)

    @pl.loop(0, la)
    def _prime(i):
        start(i)

    if tq > la:  # static
        @pl.loop(la, tq)
        def _steady(i):
            wait(i - la)
            start(i)

    @pl.loop(tq - la, tq)
    def _drain(i):
        wait(i)


def embed_scale_forward(tokens, W_E, *, tq=256, lookahead=32, debug=False):
    """Pallas equivalent of EmbedScale.forward: returns W_E[tokens, :]."""
    if debug:
        print("Tokens:", tokens.shape)

    B, S = tokens.shape
    V, D = W_E.shape
    N = B * S

    # ---- token tiling (TQ multiple of 8; pad flat tokens to a whole tile) ---
    tq = min(tq, _round_up(N, 8))
    n_pad = _round_up(N, tq)
    flat_tokens = tokens.reshape(N).astype(jnp.int32)
    if n_pad != N:
        flat_tokens = jnp.pad(flat_tokens, (0, n_pad - N))   # pad id 0: valid row

    grid = (n_pad // tq,)
    kernel = functools.partial(_gather_rows_kernel, tq=tq, lookahead=lookahead)

    out_flat = pl.pallas_call(
        kernel,
        out_shape=jax.ShapeDtypeStruct((n_pad, D), W_E.dtype),
        grid_spec=pltpu.PrefetchScalarGridSpec(
            num_scalar_prefetch=1,          # token ids -> SMEM
            grid=grid,
            in_specs=[
                # embedding table stays in HBM; rows are DMA'd on demand
                pl.BlockSpec(memory_space=pl.ANY),
            ],
            out_specs=pl.BlockSpec((tq, D), lambda t, ids: (t, 0)),
            scratch_shapes=[pltpu.SemaphoreType.DMA(())],
        ),
        compiler_params=pltpu.CompilerParams(
            dimension_semantics=("parallel",)),
    )(flat_tokens, W_E)

    embed = out_flat[:N].reshape(B, S, D)
    if debug:
        print("Embeddings:", embed.shape)
    return embed


def make_params(key, d_vocab, d_model_old, d_model_new, init_range=0.02):
    """Deterministically build W_E = concat([W_E_old, W_E_new], axis=1)."""
    k_old, k_new = jax.random.split(key)
    # W_E_old: pretend it came from the smaller pretrained model.
    W_E_old = jax.random.normal(k_old, (d_vocab, d_model_old), jnp.float32) * init_range
    # W_E_new: freshly initialized extension columns (nn.init.normal_, std=init_range).
    W_E_new = jax.random.normal(k_new, (d_vocab, d_model_new), jnp.float32) * init_range
    return jnp.concatenate([W_E_old, W_E_new], axis=1)


if __name__ == "__main__":
    key = jax.random.PRNGKey(0)

    # --- config 1: small, lane-dense (old d_model=96 + 32 new cols -> 128) ---
    d_vocab, d_model_old, d_model_new = 64, 96, 32
    batch, seq = 2, 8
    k_w, k_tok, key = jax.random.split(key, 3)
    W_E = make_params(k_w, d_vocab, d_model_old, d_model_new)
    tokens = jax.random.randint(k_tok, (batch, seq), 0, d_vocab, dtype=jnp.int32)

    embed = jax.block_until_ready(embed_scale_forward(tokens, W_E))
    ref = W_E[tokens, :]
    assert embed.shape == (batch, seq, d_model_old + d_model_new)
    assert jnp.allclose(embed, ref), "Pallas gather mismatch vs reference (cfg 1)"

    # --- config 2: exercises multi-tile tokens + token-padding paths ---------
    d_vocab2, d_old2, d_new2 = 300, 96, 32
    batch2, seq2 = 4, 80                      # N = 320 > TQ=256 -> 2 token tiles
    k_w2, k_tok2, key = jax.random.split(key, 3)
    W_E2 = make_params(k_w2, d_vocab2, d_old2, d_new2)
    tokens2 = jax.random.randint(k_tok2, (batch2, seq2), 0, d_vocab2, dtype=jnp.int32)

    embed2 = jax.block_until_ready(embed_scale_forward(tokens2, W_E2))
    ref2 = W_E2[tokens2, :]
    assert embed2.shape == (batch2, seq2, d_old2 + d_new2)
    assert jnp.allclose(embed2, ref2), "Pallas gather mismatch vs reference (cfg 2)"

    print("KERNEL_OK")
</pallas_src>

<mosaic_0001>
module attributes {stable_mosaic.version = 11 : i64} {
  func.func @_gather_rows_kernel(%arg0: i32, %arg1: memref<16xi32, #tpu.memory_space<smem>>, %arg2: memref<64x128xf32, #tpu.memory_space<any>>, %arg3: memref<16x128xf32, #tpu.memory_space<vmem>>, %arg4: memref<!tpu.dma_semaphore, #tpu.memory_space<semaphore_mem>>) attributes {dimension_semantics = [#tpu.dimension_semantics<parallel>], iteration_bounds = array<i64: 1>, scalar_prefetch = 1 : i64, scratch_operands = 1 : i64, tpu.core_type = #tpu.core_type<tc>, window_params = [{}, {transform_indices = @transform_1, window_bounds = array<i64: 16, 128>}]} {
    %c16_i32 = arith.constant 16 : i32
    %0 = arith.muli %arg0, %c16_i32 : i32
    %c0_i32 = arith.constant 0 : i32
    %c16_i32_0 = arith.constant 16 : i32
    %1 = arith.addi %c0_i32, %c16_i32_0 : i32
    %c1_i32 = arith.constant 1 : i32
    scf.for %arg5 = %c0_i32 to %1 step %c1_i32  : i32 {
      %c1_i32_6 = arith.constant 1 : i32
      %3 = arith.muli %arg5, %c1_i32_6 : i32
      %c0_i32_7 = arith.constant 0 : i32
      %4 = arith.addi %c0_i32_7, %3 : i32
      %5 = arith.addi %0, %4 : i32
      %6 = arith.index_cast %5 : i32 to index
      %7 = memref.load %arg1[%6] : memref<16xi32, #tpu.memory_space<smem>>
      %c0_i32_8 = arith.constant 0 : i32
      %8 = tpu.memref_slice %arg2[%7, %c0_i32_8] : memref<64x128xf32, #tpu.memory_space<any>> -> memref<1x128xf32, #tpu.memory_space<any>>
      %c0_i32_9 = arith.constant 0 : i32
      %9 = tpu.memref_slice %arg3[%4, %c0_i32_9] : memref<16x128xf32, #tpu.memory_space<vmem>> -> memref<1x128xf32, #tpu.memory_space<vmem>>
      tpu.enqueue_dma source(%8 : memref<1x128xf32, #tpu.memory_space<any>>) target(%9 : memref<1x128xf32, #tpu.memory_space<vmem>>) target_semaphore(%arg4 : memref<!tpu.dma_semaphore, #tpu.memory_space<semaphore_mem>>)
    }
    %c16_i32_1 = arith.constant 16 : i32
    %c0_i32_2 = arith.constant 0 : i32
    %c16_i32_3 = arith.constant 16 : i32
    %2 = arith.addi %c0_i32_2, %c16_i32_3 : i32
    %c1_i32_4 = arith.constant 1 : i32
    scf.for %arg5 = %c0_i32_2 to %2 step %c1_i32_4  : i32 {
      %c1_i32_6 = arith.constant 1 : i32
      %3 = arith.muli %arg5, %c1_i32_6 : i32
      %c0_i32_7 = arith.constant 0 : i32
      %4 = arith.addi %c0_i32_7, %3 : i32
      %c0_i32_8 = arith.constant 0 : i32
      %c0_i32_9 = arith.constant 0 : i32
      %5 = tpu.memref_slice %arg2[%c0_i32_8, %c0_i32_9] : memref<64x128xf32, #tpu.memory_space<any>> -> memref<1x128xf32, #tpu.memory_space<any>>
      %c0_i32_10 = arith.constant 0 : i32
      %6 = tpu.memref_slice %arg3[%4, %c0_i32_10] : memref<16x128xf32, #tpu.memory_space<vmem>> -> memref<1x128xf32, #tpu.memory_space<vmem>>
      tpu.wait_dma2 semaphore(%arg4 : memref<!tpu.dma_semaphore, #tpu.memory_space<semaphore_mem>>) src(%5 : memref<1x128xf32, #tpu.memory_space<any>>) dst(%6 : memref<1x128xf32, #tpu.memory_space<vmem>>)
    }
    %c16_i32_5 = arith.constant 16 : i32
    return
  }
  func.func @transform_1(%arg0: i32, %arg1: memref<16xi32, #tpu.memory_space<smem>>) -> (i32, i32) {
    %c0_i32 = arith.constant 0 : i32
    %c0_i32_0 = arith.constant 0 : i32
    return %arg0, %c0_i32 : i32, i32
  }
}

</mosaic_0001>

<bundles_post_ra>
// kernel: tpu_custom_call.1
= control target key start
LH: loop header
LB: loop body
LE: loop exit
PB: predicated region body
PF: predicated region fallthrough
CT: control target
= control target key end

     0   :  { %s249_s0 = inlined_call_operand.hbm [shape: s32[16], index: 0, kind: input, shape index: {}]   ;;  %s250_s1 = inlined_call_operand.hbm [shape: f32[64,128], index: 1, kind: input, shape index: {}]   ;;  %s251_s2 = inlined_call_operand.hbm [shape: f32[16,128], index: 2, kind: output, shape index: {}]  }
   0x1   :  { %s101_s11 = scalar_lea.hbm %s249_s0, 16 }
   0x2   :  { %p102_p0 = scmp.ne.s32.totalorder %s249_s0, %s101_s11  ;;  %p105_p1 = scmp.lt.u32.totalorder %s101_s11, %s249_s0 }
   0x4   :  { %p107_p2 = pnand %p105_p1, %p102_p0 }
   0x6   :  { %110 = shalt.err (!%p107_p2)  }
   0x7   :  { %s179_s16 = smov [#allocation4]  }
   0x8   :  { %8 = dma.hbm_to_smem %s249_s0, 16, %s179_s16, [#allocation3] }
   0x9   :  { %165 = dma.done.wait [#allocation3], 16 }
   0xa   :  { %166 = vsyncadd [#allocation3], 4294967280 }
   0xb   :  { %10 = sfence }
   0xc   :  { %11 = vsyncpa [#allocation6], 0  ;;  %s210_s19 = smov 0  }
   0xd LB: > { %s20_s20 = sld [smem:[#allocation4 + %s173_s19]]  ;;  %s23_s21 = scalar_lea.vmem [#allocation5], %s173_s19  ;;  %s173_s19 = sphi %s210_s19, %s18_s19  }
   0xe   : > { %s31_s22 = sshll.u32 %s23_s21, 4  ;;  %s113_s29 = scalar_lea.hbm %s250_s1, 1024  ;;  %s32_s22 = int_to_ptr.vmem [resolvable:$true] %s31_s22 }
  0x13   : > { %s79_s23 = sshll.u32 %s20_s20, 4 }
  0x14   : > { %s22_s25 = scalar_lea.hbm %s250_s1, %s79_s23 }
  0x15   : > { %s111_s26 = scalar_lea.hbm %s22_s25, 16  ;;  %p114_p4 = scmp.lt.u32.totalorder %s22_s25, %s250_s1 }
  0x16   : > { %p112_p3 = scmp.ne.s32.totalorder %s22_s25, %s111_s26  ;;  %p115_p5 = scmp.lt.u32.totalorder %s113_s29, %s111_s26 }
  0x17   : > { %p117_p7 = scmp.lt.u32.totalorder %s111_s26, %s22_s25 }
  0x18   : > { %p116_p6 = por %p115_p5, %p114_p4 }
  0x1a   : > { %p118_p8 = por %p117_p7, %p116_p6 }
  0x1c   : > { %p119_p9 = pnand %p118_p8, %p112_p3 }
  0x1e   : > { %122 = shalt.err (!%p119_p9)  }
  0x1f   : > { %s123_s4 = scalar_lea.vmem %s32_s22, 16  ;;  %s180_s5 = smov [#allocation5]  }
  0x20   : > { %p124_p10 = scmp.ne.s32.totalorder %s32_s22, %s123_s4  ;;  %s125_s6 = sshll.u32 %s180_s5, 4  ;;  %s226_s6 = int_to_ptr.vmem [resolvable:$false] %s125_s6 }
  0x21   : > { %s127_s7 = scalar_lea.vmem %s226_s6, 256  ;;  %p128_p11 = scmp.lt.s32.totalorder %s32_s22, %s226_s6 }
  0x22   : > { %p129_p12 = scmp.lt.s32.totalorder %s127_s7, %s123_s4 }
  0x24   : > { %p130_p13 = por %p129_p12, %p128_p11 }
  0x26   : > { %p131_p0 = pnand %p130_p13, %p124_p10 }
  0x28   : > { %134 = shalt.err (!%p131_p0)  }
  0x29   : > { %34 = dma.hbm_to_vmem [thread:$0]  %s22_s25, 16, %s32_s22, [#allocation2] }
  0x2a   : > { %s18_s19 = sadd.s32 1, %s173_s19  }
  0x2b   : > { %p15_p1 = scmp.ge.s32.totalorder %s18_s19, 16  }
  0x2c   :  { %s175_s8 = smov (%p15_p1), 0  }
  0x2d   :  { %17 = sbr.rel (!%p15_p1) target bundleno = 13 (0xd), region = 40 }
  0x34 LB: > { %167 = dma.done.wait [#allocation2], 16  ;;  %s177_s8 = sphi %s175_s8, %s40_s8  }
  0x35   : > { %168 = vsyncadd [#allocation2], 4294967280  ;;  %s40_s8 = sadd.s32 1, %s177_s8  }
  0x36   : > { %p37_p2 = scmp.ge.s32.totalorder %s40_s8, 16  }
  0x37   :  { %p136_p3 = scmp.ne.s32.totalorder (%p37_p2), %s226_s6, %s127_s7  ;;  %p140_p4 = scmp.lt.s32.totalorder (%p37_p2), %s226_s6, %s226_s6 }
  0x38   :  { %39 = sbr.rel (!%p37_p2) target bundleno = 52 (0x34), region = 51  ;;  %p141_p5 = scmp.lt.s32.totalorder (%p37_p2), %s127_s7, %s127_s7 }
  0x3a   :  { %p142_p6 = por (%p37_p2), %p141_p5, %p140_p4 }
  0x3c   :  { %p143_p7 = pnand (%p37_p2), %p142_p6, %p136_p3 }
  0x3f   :  { %146 = shalt.err (!%p143_p7)
}
  0x40   :  { %s147_s10 = scalar_lea.hbm %s251_s2, 256 }
  0x41   :  { %p148_p8 = scmp.ne.s32.totalorder %s251_s2, %s147_s10  ;;  %p151_p9 = scmp.lt.u32.totalorder %s147_s10, %s251_s2 }
  0x43   :  { %p153_p10 = pnand %p151_p9, %p148_p8 }
  0x45   :  { %156 = shalt.err (!%p153_p10)
}
  0x46   :  { %s181_s15 = smov 128   ;;  %s182_s16 = smov 8  }
  0x47   :  { %55 = dma.vmem_to_hbm [thread:$0]  %s226_s6, 256, %s251_s2, [#allocation6], %s181_s15, %s181_s15, %s182_s16  }
  0x48   :  { %169 = dma.done.wait [#allocation6], 256  }
  0x49   :  { %170 = vsyncadd [#allocation6], 4294967040 }
  0x4a   :  { %59 = vsyncpa [#allocation6], 1 }
  0x4b   :  { %60 = vsyncmov [#allocation2] }
  0x4e   :  { %s61_s19 = vpop.sfrf %60 }
  0x4f   :  { %p80_p11 = scmp.ne.s32.totalorder %s61_s19, 0 }
  0x51   :  { %65 = shalt.err (%p80_p11)  }

</bundles_post_ra>
